<compile_context>
chip_gen: v7x
topology: tpu7x:2x2x1
jax: 0.10.0
libtpu: 0.0.40
codegen_flags: <defaults>
</compile_context>

<pallas_src>
import jax
import jax.numpy as jnp
from jax import lax
from jax.experimental import pallas as pl
from jax.experimental.pallas import tpu as pltpu


def _round_up(x, m):
    return (x + m - 1) // m * m


def _pad2(a, rows, cols):
    r, c = a.shape
    if r == rows and c == cols:
        return a
    return jnp.pad(a, ((0, rows - r), (0, cols - c)))


def _largest_divisor(n, unit, cap):
    """Largest multiple of `unit` dividing `n` (a multiple of `unit`), <= cap."""
    best = unit
    d = unit
    limit = min(n, max(cap, unit))
    while d <= limit:
        if n % d == 0:
            best = d
        d += unit
    return best


def _fc_head_kernel(x_ref, wt_ref, s_ref, be_ref, o_ref):
    # x_ref : (tm, Kp)  features tile (full contraction dim in one block)
    # wt_ref: (Kp, tn)  W^T tile
    # s_ref : (1, tn)   per-column scale  (1.0 outside [low, high))
    # be_ref: (1, tn)   effective bias    (scale*b + offs)
    # o_ref : (tm, tn)  logits tile
    acc = jnp.dot(x_ref[...], wt_ref[...], preferred_element_type=jnp.float32)
    o_ref[...] = (acc * s_ref[...] + be_ref[...]).astype(o_ref.dtype)


def prepare_fc_params(fc_weight, fc_bias, *, param_dtype=None):
    """Precompute the padded W^T and bias ONCE (cache across forward calls).

    param_dtype=jnp.bfloat16 selects the reduced-precision MXU path (numerics
    decision: weights/features are rounded, accumulation stays f32).
    """
    C, D = fc_weight.shape
    Np = _round_up(C, 128)
    Kp = _round_up(D, 128)
    wt = jnp.transpose(fc_weight)
    if param_dtype is not None:
        wt = wt.astype(param_dtype)
    wt_p = _pad2(wt, Kp, Np)                                         # (Kp, Np)
    b_p = _pad2(fc_bias.astype(jnp.float32).reshape(1, C), 1, Np)    # (1, Np)
    return {"wt": wt_p, "bias": b_p, "out_features": C, "in_features": D}


def _fc_head_pallas(features, wt_p, scale, bias_eff, n_classes):
    B, D = features.shape
    Kp, Np = wt_p.shape
    assert D <= Kp, "feature dim larger than prepared weight"
    out_dtype = features.dtype
    cdtype = wt_p.dtype

    # dtype-aware sublane rounding: f32 -> 8, bf16 -> 16, int8/fp8 -> 32.
    sub = max(8, 32 // max(1, jnp.dtype(cdtype).itemsize))
    Mp = _round_up(max(B, 1), sub)

    xp = features
    if xp.dtype != cdtype:
        xp = xp.astype(cdtype)
    xp = _pad2(xp, Mp, Kp)

    # Tiles divide the (minimally) padded dims. Whole batch in one M tile when
    # possible so the weight stream is read from HBM exactly once.
    tm = _largest_divisor(Mp, sub, 1024)
    tn = _largest_divisor(Np, 128, 512)
    if (Mp // tm) * (Np // tn) == 1 and Np >= 256:
        # v7x has 2 TensorCores sharded over "parallel" axes: give it >=2 tiles.
        tn = _largest_divisor(Np, 128, Np // 2)

    # Keep the double-buffered footprint under ~40 MiB (v7x VMEM is 64 MiB).
    isz = jnp.dtype(cdtype).itemsize
    osz = jnp.dtype(out_dtype).itemsize

    def footprint(tm_, tn_):
        return 2 * (tm_ * Kp * isz + Kp * tn_ * isz + tm_ * tn_ * osz + 2 * tn_ * 4)

    budget = 40 * 1024 * 1024
    while footprint(tm, tn) > budget:
        if tm > sub and tm * Kp * isz >= Kp * tn * isz:
            new_tm = _largest_divisor(Mp, sub, tm - sub)
            if new_tm == tm:
                break
            tm = new_tm
        elif tn > 128:
            new_tn = _largest_divisor(Np, 128, tn - 128)
            if new_tn == tn:
                break
            tn = new_tn
        else:
            break

    grid = (Mp // tm, Np // tn)

    out = pl.pallas_call(
        _fc_head_kernel,
        out_shape=jax.ShapeDtypeStruct((Mp, Np), out_dtype),
        grid=grid,
        in_specs=[
            pl.BlockSpec((tm, Kp), lambda i, j: (i, 0)),   # features (full K)
            pl.BlockSpec((Kp, tn), lambda i, j: (0, j)),   # W^T
            pl.BlockSpec((1, tn), lambda i, j: (0, j)),    # per-column scale
            pl.BlockSpec((1, tn), lambda i, j: (0, j)),    # effective bias
        ],
        out_specs=pl.BlockSpec((tm, tn), lambda i, j: (i, j)),
        compiler_params=pltpu.CompilerParams(
            dimension_semantics=("parallel", "parallel"),
            vmem_limit_bytes=48 * 1024 * 1024,
        ),
    )(xp, wt_p, scale, bias_eff)

    return out[:B, :n_classes]


def fcs_incremental_net_forward(features, fc_weight=None, fc_bias=None, *,
                                prepared=None, alpha=1.0, beta=0.0,
                                low_range=0, high_range=0):
    """Pallas forward of FCSIncrementalNet's classifier head.

    Mirrors `out = self.fc(x['features']); out.update(x)` given pre-extracted
    convnet features. alpha/beta/low/high default to the identity epilogue
    (plain FCSIncrementalNet semantics); pass `prepared=prepare_fc_params(...)`
    to keep the weight transpose/pad out of the per-step hot path.
    Note: if high_range > num classes, the affine also touches padded columns
    inside [low, high); they are sliced off, so this is harmless.
    """
    if prepared is None:
        prepared = prepare_fc_params(fc_weight, fc_bias)
    wt_p = prepared["wt"]
    b_p = prepared["bias"]
    n_classes = prepared["out_features"]
    Np = wt_p.shape[1]

    # Fold the incremental-bias affine into per-column scale / effective bias:
    #   y = scale*(x@W^T) + (scale*b + offs)
    col = lax.broadcasted_iota(jnp.int32, (1, Np), 1)
    in_range = (col >= jnp.int32(low_range)) & (col < jnp.int32(high_range))
    scale = jnp.where(in_range, jnp.float32(alpha), jnp.float32(1.0))
    offs = jnp.where(in_range, jnp.float32(beta), jnp.float32(0.0))
    bias_eff = b_p * scale + offs

    logits = _fc_head_pallas(features, wt_p, scale, bias_eff, n_classes)
    return {"logits": logits, "features": features}


if __name__ == "__main__":
    key = jax.random.PRNGKey(0)
    kx, kw, kb = jax.random.split(key, 3)

    # Small, module-consistent shapes: batch=2 images whose convnet features
    # have dim 32; classifier head with 16 classes.
    B, D, C = 2, 32, 16
    features = jax.random.normal(kx, (B, D), dtype=jnp.float32)
    fc_weight = jax.random.normal(kw, (C, D), dtype=jnp.float32) * 0.05
    fc_bias = jax.random.normal(kb, (C,), dtype=jnp.float32) * 0.1

    # Weight transpose/pad precomputed once (cached), per the perf review.
    prepared = prepare_fc_params(fc_weight, fc_bias)

    # 1) Plain FCSIncrementalNet forward: logits = features @ W.T + b
    out = fcs_incremental_net_forward(features, prepared=prepared)
    logits = jax.block_until_ready(out["logits"])
    ref = features @ fc_weight.T + fc_bias
    assert jnp.allclose(logits, ref, atol=1e-4, rtol=1e-4), "fc head mismatch"

    # 2) Fused incremental-bias epilogue on a class slice.
    alpha, beta, lo, hi = 1.5, -0.25, 4, 12
    out2 = fcs_incremental_net_forward(features, prepared=prepared,
                                       alpha=alpha, beta=beta,
                                       low_range=lo, high_range=hi)
    logits2 = jax.block_until_ready(out2["logits"])
    ref2 = ref.at[:, lo:hi].set(alpha * ref[:, lo:hi] + beta)
    assert jnp.allclose(logits2, ref2, atol=1e-4, rtol=1e-4), "fused affine mismatch"

    print("KERNEL_OK")
</pallas_src>

<mosaic_0001>
module attributes {stable_mosaic.version = 11 : i64} {
  func.func @_fc_head_kernel(%arg0: i32, %arg1: i32, %arg2: memref<8x128xf32, #tpu.memory_space<vmem>>, %arg3: memref<128x128xf32, #tpu.memory_space<vmem>>, %arg4: memref<1x128xf32, #tpu.memory_space<vmem>>, %arg5: memref<1x128xf32, #tpu.memory_space<vmem>>, %arg6: memref<8x128xf32, #tpu.memory_space<vmem>>) attributes {dimension_semantics = [#tpu.dimension_semantics<parallel>, #tpu.dimension_semantics<parallel>], iteration_bounds = array<i64: 1, 1>, scalar_prefetch = 0 : i64, scratch_operands = 0 : i64, tpu.core_type = #tpu.core_type<tc>, window_params = [{transform_indices = @transform_0, window_bounds = array<i64: 8, 128>}, {transform_indices = @transform_1, window_bounds = array<i64: 128, 128>}, {transform_indices = @transform_2, window_bounds = array<i64: 1, 128>}, {transform_indices = @transform_3, window_bounds = array<i64: 1, 128>}, {transform_indices = @transform_4, window_bounds = array<i64: 8, 128>}]} {
    %c0 = arith.constant 0 : index
    %c0_0 = arith.constant 0 : index
    %0 = vector.load %arg2[%c0, %c0_0] : memref<8x128xf32, #tpu.memory_space<vmem>>, vector<8x128xf32>
    %c0_1 = arith.constant 0 : index
    %c0_2 = arith.constant 0 : index
    %1 = vector.load %arg3[%c0_1, %c0_2] : memref<128x128xf32, #tpu.memory_space<vmem>>, vector<128x128xf32>
    %cst = arith.constant dense<0.000000e+00> : vector<8x128xf32>
    %2 = tpu.matmul %0, %1, %cst {dimension_numbers = #tpu.dot_dimension_numbers<[1], [0], [0], [1], [0, 0, 1, 1], [], []>} : vector<8x128xf32>, vector<128x128xf32>, vector<8x128xf32> -> vector<8x128xf32>
    %c0_3 = arith.constant 0 : index
    %c0_4 = arith.constant 0 : index
    %3 = vector.load %arg4[%c0_3, %c0_4] : memref<1x128xf32, #tpu.memory_space<vmem>>, vector<1x128xf32>
    %4 = vector.broadcast %3 : vector<1x128xf32> to vector<8x128xf32>
    %5 = arith.mulf %2, %4 : vector<8x128xf32>
    %c0_5 = arith.constant 0 : index
    %c0_6 = arith.constant 0 : index
    %6 = vector.load %arg5[%c0_5, %c0_6] : memref<1x128xf32, #tpu.memory_space<vmem>>, vector<1x128xf32>
    %7 = vector.broadcast %6 : vector<1x128xf32> to vector<8x128xf32>
    %8 = arith.addf %5, %7 : vector<8x128xf32>
    %c0_7 = arith.constant 0 : index
    %c0_8 = arith.constant 0 : index
    %9 = vector.load %arg6[%c0_7, %c0_8] : memref<8x128xf32, #tpu.memory_space<vmem>>, vector<8x128xf32>
    tpu.vector_store %arg6[%c0_7, %c0_8], %8 {strides = array<i32>} : memref<8x128xf32, #tpu.memory_space<vmem>>, vector<8x128xf32>,
    return
  }
  func.func @transform_0(%arg0: i32, %arg1: i32) -> (i32, i32) {
    %c0_i32 = arith.constant 0 : i32
    %c0_i32_0 = arith.constant 0 : i32
    return %arg0, %c0_i32 : i32, i32
  }
  func.func @transform_1(%arg0: i32, %arg1: i32) -> (i32, i32) {
    %c0_i32 = arith.constant 0 : i32
    %c0_i32_0 = arith.constant 0 : i32
    return %c0_i32, %arg1 : i32, i32
  }
  func.func @transform_2(%arg0: i32, %arg1: i32) -> (i32, i32) {
    %c0_i32 = arith.constant 0 : i32
    %c0_i32_0 = arith.constant 0 : i32
    return %c0_i32, %arg1 : i32, i32
  }
  func.func @transform_3(%arg0: i32, %arg1: i32) -> (i32, i32) {
    %c0_i32 = arith.constant 0 : i32
    %c0_i32_0 = arith.constant 0 : i32
    return %c0_i32, %arg1 : i32, i32
  }
  func.func @transform_4(%arg0: i32, %arg1: i32) -> (i32, i32) {
    %c0_i32 = arith.constant 0 : i32
    return %arg0, %arg1 : i32, i32
  }
}

</mosaic_0001>

<bundles_post_ra>
// kernel: tpu_custom_call.1
= control target key start
LH: loop header
LB: loop body
LE: loop exit
PB: predicated region body
PF: predicated region fallthrough
CT: control target
= control target key end

     0   :  { %9 = vsyncpa [#allocation3], 0  ;;  %s404_s0 = inlined_call_operand.hbm [shape: f32[8,128], index: 0, kind: input, shape index: {}]   ;;  %s405_s1 = inlined_call_operand.hbm [shape: f32[128,128], index: 1, kind: input, shape index: {}]   ;;  %s406_s2 = inlined_call_operand.vmem [shape: f32[1,128], index: 2, kind: input, shape index: {}]   ;;  %s407_s3 = inlined_call_operand.vmem [shape: f32[1,128], index: 3, kind: input, shape index: {}]   ;;  %s408_s4 = inlined_call_operand.hbm [shape: f32[8,128], index: 4, kind: output, shape index: {}]  }
   0x1   :  { %10 = vsyncpa [#allocation6], 0 }
   0x2   :  { %11 = vsyncpa [#allocation4], 0  ;;  %s322_s15 = smov [#allocation2]   ;;  %s323_s17 = smov [#allocation5]  }
   0x3   :  { %s18_s16 = sshll.u32 %s322_s15, 4  ;;  %s27_s18 = sshll.u32 %s323_s17, 4  ;;  %s19_s16 = int_to_ptr.vmem [resolvable:$true] %s18_s16  ;;  %s355_s18 = int_to_ptr.vmem [resolvable:$true] %s27_s18 }
   0x4   :  { %s250_s21 = scalar_lea.hbm %s404_s0, 128 }
   0x5   :  { %p251_p0 = scmp.ne.s32.totalorder %s404_s0, %s250_s21  ;;  %p254_p1 = scmp.lt.u32.totalorder %s250_s21, %s404_s0 }
   0x7   :  { %p256_p2 = pnand %p254_p1, %p251_p0 }
   0x9   :  { %259 = shalt.err (!%p256_p2)
}
   0xa   :  { %s260_s26 = scalar_lea.vmem %s19_s16, 128  ;;  %p265_p4 = scmp.lt.s32.totalorder %s19_s16, %s19_s16 }
   0xb   :  { %p261_p3 = scmp.ne.s32.totalorder %s19_s16, %s260_s26  ;;  %p266_p5 = scmp.lt.s32.totalorder %s260_s26, %s260_s26 }
   0xd   :  { %p267_p6 = por %p266_p5, %p265_p4 }
   0xf   :  { %p268_p7 = pnand %p267_p6, %p261_p3 }
  0x11   :  { %271 = shalt.err (!%p268_p7)
}
  0x12   :  { %21 = dma.hbm_to_vmem [thread:$0]  %s404_s0, 128, %s19_s16, [#allocation3]  }
  0x13   :  { %s272_s5 = scalar_lea.hbm %s405_s1, 2048 }
  0x14   :  { %p273_p8 = scmp.ne.s32.totalorder %s405_s1, %s272_s5  ;;  %p276_p9 = scmp.lt.u32.totalorder %s272_s5, %s405_s1 }
  0x16   :  { %p278_p10 = pnand %p276_p9, %p273_p8 }
  0x18   :  { %281 = shalt.err (!%p278_p10)
}
  0x19   :  { %s282_s10 = scalar_lea.vmem %s355_s18, 2048  ;;  %p287_p12 = scmp.lt.s32.totalorder %s355_s18, %s355_s18 }
  0x1a   :  { %p283_p11 = scmp.ne.s32.totalorder %s355_s18, %s282_s10  ;;  %p288_p13 = scmp.lt.s32.totalorder %s282_s10, %s282_s10 }
  0x1c   :  { %p289_p0 = por %p288_p13, %p287_p12 }
  0x1e   :  { %p290_p1 = pnand %p289_p0, %p283_p11 }
  0x20   :  { %293 = shalt.err (!%p290_p1)
}
  0x21   :  { %s324_s0 = smov 128   ;;  %s325_s11 = smov 8  }
  0x22   :  { %33 = dma.hbm_to_vmem [thread:$0]  %s405_s1, 2048, %s355_s18, [#allocation6], %s324_s0, %s324_s0, %s325_s11  }
  0x23   :  { %316 = dma.done.wait [#allocation3], 128  }
  0x24   :  { %317 = vsyncadd [#allocation3], 4294967168 }
  0x25   :  { %318 = dma.done.wait [#allocation6], 2048  }
  0x26   :  { %319 = vsyncadd [#allocation6], 4294965248  ;;  %v326_v0 = vmov 0.0|0.0   ;;  %vm327_vm0 = vmmov 0   ;;  %v328_v1 = vmov 0.0   ;;  %v45_v2 = vld [vmem:[#allocation5] sm:$0xff] }
  0x27   :  { %218 = vmatprep.subr.bf16.mxu0 %v326_v0  ;;  %215 = vmatprep.mubr.msk.f32.mxu0 %vm327_vm0, %v328_v1  ;;  %v46_v3 = vld [vmem:[#allocation5 + $0x8] sm:$0xff]  ;;  %v47_v4 = vld [vmem:[#allocation5 + $0x10] sm:$0xff]  ;;  %v48_v6 = vld [vmem:[#allocation5 + $0x18] sm:$0xff]  ;;  %s329_s17 = smov [#allocation7]  }
  0x28   :  { %v219_v5 = vpack.c.bf16 %v46_v3, %v45_v2  ;;  %v222_v7 = vpack.c.bf16 %v48_v6, %v47_v4  ;;  %v49_v8 = vld [vmem:[#allocation5 + $0x20] sm:$0xff]  ;;  %v50_v9 = vld [vmem:[#allocation5 + $0x28] sm:$0xff]  ;;  %v51_v11 = vld [vmem:[#allocation5 + $0x30] sm:$0xff]  ;;  %s154_s18 = sshll.u32 %s329_s17, 4  ;;  %s155_s18 = int_to_ptr.vmem [resolvable:$true] %s154_s18 }
  0x29   :  { %v225_v10 = vpack.c.bf16 %v50_v9, %v49_v8  ;;  %v52_v12 = vld [vmem:[#allocation5 + $0x38] sm:$0xff]  ;;  %v53_v14 = vld [vmem:[#allocation5 + $0x40] sm:$0xff]  ;;  %v54_v15 = vld [vmem:[#allocation5 + $0x48] sm:$0xff]  ;;  %s294_s19 = scalar_lea.vmem %s155_s18, 128  ;;  %p299_p3 = scmp.lt.s32.totalorder %s155_s18, %s155_s18 }
  0x2a   :  { %220 = vmatpush3.bf16.msra.mxu0 %v219_v5  ;;  %v228_v13 = vpack.c.bf16 %v52_v12, %v51_v11  ;;  %v231_v16 = vpack.c.bf16 %v54_v15, %v53_v14  ;;  %v55_v17 = vld [vmem:[#allocation5 + $0x50] sm:$0xff]  ;;  %v56_v18 = vld [vmem:[#allocation5 + $0x58] sm:$0xff]  ;;  %v57_v20 = vld [vmem:[#allocation5 + $0x60] sm:$0xff]  ;;  %p295_p2 = scmp.ne.s32.totalorder %s155_s18, %s294_s19  ;;  %p300_p4 = scmp.lt.s32.totalorder %s294_s19, %s294_s19 }
  0x2b   :  { %221 = vmatprep.subr.bf16.mxu0 %v326_v0  ;;  %v234_v19 = vpack.c.bf16 %v56_v18, %v55_v17  ;;  %v58_v21 = vld [vmem:[#allocation5 + $0x68] sm:$0xff]  ;;  %v59_v23 = vld [vmem:[#allocation5 + $0x70] sm:$0xff]  ;;  %v60_v24 = vld [vmem:[#allocation5 + $0x78] sm:$0xff] }
  0x2c   :  { %v237_v22 = vpack.c.bf16 %v58_v21, %v57_v20  ;;  %v240_v25 = vpack.c.bf16 %v60_v24, %v59_v23  ;;  %v44_v26 = vld [vmem:[#allocation2] sm:$0xff]  ;;  %p301_p5 = por %p300_p4, %p299_p3 }
  0x2d   :  { %v164_v27 = vld [vmem:[%s406_s2] ss:$0 sm:$0xff] }
  0x2e   :  { %223 = vmatpush3.bf16.msra.mxu0 %v222_v7  ;;  %v165_v29 = vld [vmem:[%s407_s3] ss:$0 sm:$0xff]  ;;  %p302_p6 = pnand %p301_p5, %p295_p2 }
  0x2f   :  { %224 = vmatprep.subr.bf16.mxu0 %v326_v0 }
  0x32   :  { %226 = vmatpush3.bf16.msra.mxu0 %v225_v10 }
  0x33   :  { %227 = vmatprep.subr.bf16.mxu0 %v326_v0 }
  0x36   :  { %229 = vmatpush3.bf16.msra.mxu0 %v228_v13 }
  0x37   :  { %230 = vmatprep.subr.bf16.mxu0 %v326_v0 }
  0x3a   :  { %232 = vmatpush3.bf16.msra.mxu0 %v231_v16 }
  0x3b   :  { %233 = vmatprep.subr.bf16.mxu0 %v326_v0 }
  0x3e   :  { %235 = vmatpush3.bf16.msra.mxu0 %v234_v19 }
  0x3f   :  { %236 = vmatprep.subr.bf16.mxu0 %v326_v0 }
  0x42   :  { %238 = vmatpush3.bf16.msra.mxu0 %v237_v22 }
  0x43   :  { %239 = vmatprep.subr.bf16.mxu0 %v326_v0 }
  0x46   :  { %241 = vmatpush3.bf16.msra.mxu0 %v240_v25 }
  0x49   :  { %216 = vmatmul.mubr.f32.vlgmr.msra.gmra.mrb[0].mxu0 %v44_v26 }
 0x11c   :  { %v127_v28 = vpop.f32.mrb[0].mxu0 }
 0x11d   :  { %v138_v30 = vmul.f32 %v164_v27, %v127_v28  ;;  %v217_v31 = vpop.f32.mrb[1].mxu0 }
 0x11f   :  { %v146_v32 = vadd.f32 %v165_v29, %v138_v30 }
 0x121   :  { %147 = vst [vmem:[#allocation7] sm:$0xff] %v146_v32 }
 0x122   :  { %305 = shalt.err (!%p302_p6)
}
 0x123   :  { %s306_s21 = scalar_lea.hbm %s408_s4, 128 }
 0x124   :  { %p307_p7 = scmp.ne.s32.totalorder %s408_s4, %s306_s21  ;;  %p310_p8 = scmp.lt.u32.totalorder %s306_s21, %s408_s4 }
 0x126   :  { %p312_p9 = pnand %p310_p8, %p307_p7 }
 0x128   :  { %315 = shalt.err (!%p312_p9)
}
 0x129   :  { %157 = dma.vmem_to_hbm [thread:$0]  %s155_s18, 128, %s408_s4, [#allocation4]  }
 0x12a   :  { %320 = dma.done.wait [#allocation4], 128  }
 0x12b   :  { %321 = vsyncadd [#allocation4], 4294967168 }
 0x12c   :  { %161 = vsyncpa [#allocation3], 1 }
 0x12d   :  { %162 = vsyncpa [#allocation6], 1 }
 0x12e   :  { %163 = vsyncpa [#allocation4], 1 }

</bundles_post_ra>
